<compile_context>
chip_gen: v7x
topology: tpu7x:2x2x1
jax: 0.10.0
libtpu: 0.0.40
codegen_flags: <defaults>
</compile_context>

<pallas_src>
import functools

import jax
import jax.numpy as jnp
from jax import lax
from jax.experimental import pallas as pl
from jax.experimental.pallas import tpu as pltpu

LANES = 128
SUBLANES = 8


def _dice_kernel(x_ref, y_ref, o_ref, acc_xy, acc_sq, *,
                 rows, row_tile, steps_per_split, mask_rows, fold):
    """Accumulates elementwise partial products; reduces cross-lane once.

    x_ref, y_ref : (row_tile, 128) VMEM tiles of the flattened inputs
    o_ref        : (1, 2) SMEM partial output: [sum(x*y), sum(x*x + y*y)]
    acc_xy/acc_sq: (8, 128) f32 VMEM single-vreg accumulators (or
                   (row_tile, 128) for tiny, non-8-aligned full-extent tiles)
    """
    c = pl.program_id(0)   # per-TensorCore split (size 1 on single-TC chips)
    i = pl.program_id(1)   # sequential reduction steps within the split

    @pl.when(i == 0)
    def _init():
        acc_xy[...] = jnp.zeros_like(acc_xy)
        acc_sq[...] = jnp.zeros_like(acc_sq)

    def _accumulate(x, y):
        xy = x * y
        sq = x * x + y * y
        if fold:
            # Fold sublane groups onto one vreg: leading-axis sum = VALU adds,
            # no XLU traffic, no full-tile accumulator store.
            acc_xy[...] += xy.reshape(-1, SUBLANES, LANES).sum(axis=0)
            acc_sq[...] += sq.reshape(-1, SUBLANES, LANES).sum(axis=0)
        else:
            acc_xy[...] += xy
            acc_sq[...] += sq

    x = x_ref[...].astype(jnp.float32)
    y = y_ref[...].astype(jnp.float32)

    if mask_rows:
        row0 = (c * steps_per_split + i) * row_tile
        ragged = row0 + row_tile > rows

        @pl.when(jnp.logical_not(ragged))
        def _fast():            # common path: no mask work at all
            _accumulate(x, y)

        @pl.when(ragged)
        def _masked():          # last ragged block + clamped duplicate blocks
            rid = row0 + lax.broadcasted_iota(jnp.int32, (row_tile, 1), 0)
            valid = rid < rows
            _accumulate(jnp.where(valid, x, 0.0), jnp.where(valid, y, 0.0))
    else:
        _accumulate(x, y)

    @pl.when(i == pl.num_programs(1) - 1)
    def _finalize():
        o_ref[0, 0] = jnp.sum(acc_xy[...])
        o_ref[0, 1] = jnp.sum(acc_sq[...])


def _device_kind():
    try:
        return jax.devices()[0].device_kind.lower()
    except Exception:
        return ""


@functools.partial(jax.jit, static_argnames=("row_tile",))
def binary_dice_loss(inputs, target, *, row_tile=None):
    assert inputs.shape == target.shape, "predict & target shape do not match"

    kind = _device_kind()
    # 2-way split only where there are two TensorCores per chip (v7x).
    num_splits = 2 if "v7" in kind else 1
    if row_tile is None:
        # Generation-dependent ceiling: v6e (128 MiB VMEM) can take 4 MiB input
        # blocks; v7x (64 MiB VMEM, both TCs double-buffering) and v5e stay at
        # 2 MiB blocks per core.
        row_tile = 8192 if "v6" in kind else 4096

    x = jnp.ravel(inputs)          # native dtype; contiguous reshape is free
    y = jnp.ravel(target)
    total = x.shape[0]

    # Tiny, sum-neutral pad only when the element count is not lane-aligned.
    rem = total % LANES
    if rem:
        x = jnp.pad(x, (0, LANES - rem))
        y = jnp.pad(y, (0, LANES - rem))
    rows = (total + LANES - 1) // LANES
    x2d = x.reshape(rows, LANES)
    y2d = y.reshape(rows, LANES)

    # Round the row tile to the dtype's packed sublane granularity
    # (8 for 4-byte, 16 for 2-byte, 32 for 1-byte dtypes).
    itemsize = int(jnp.dtype(inputs.dtype).itemsize)
    sub_gran = SUBLANES * max(1, 4 // max(1, itemsize))
    row_tile = max(sub_gran, (row_tile // sub_gran) * sub_gran)
    if rows >= sub_gran:
        eff_tile = min(row_tile, (rows // sub_gran) * sub_gran)
    else:
        eff_tile = rows            # tiny input: full-extent block is allowed
    fold = (eff_tile % SUBLANES) == 0
    acc_shape = (SUBLANES, LANES) if fold else (eff_tile, LANES)

    steps_total = pl.cdiv(rows, eff_tile)
    spc = pl.cdiv(steps_total, num_splits)          # steps per split
    capacity_rows = num_splits * spc * eff_tile
    needs_mask = capacity_rows != rows
    needs_clamp = num_splits * spc > steps_total

    if needs_clamp:
        # Clamp fully-padded logical blocks onto the last real block (the mask
        # zeroes their contribution) so no out-of-bounds DMA is issued.
        in_map = lambda c, i: (jnp.minimum(c * spc + i, steps_total - 1), 0)
    else:
        in_map = lambda c, i: (c * spc + i, 0)

    kernel = functools.partial(
        _dice_kernel, rows=rows, row_tile=eff_tile,
        steps_per_split=spc, mask_rows=needs_mask, fold=fold)

    # 2 inputs x 2 pipeline buffers x one block, plus small headroom; clamp so
    # the request is valid on every generation (incl. 64 MiB-VMEM v7x).
    in_block_bytes = eff_tile * LANES * itemsize
    vmem_limit = int(min(48 << 20, max(24 << 20, 4 * in_block_bytes + (4 << 20))))

    if num_splits > 1:
        dim_sems = (getattr(pltpu, "CORE_PARALLEL", pltpu.PARALLEL),
                    pltpu.ARBITRARY)
    else:
        dim_sems = (pltpu.ARBITRARY, pltpu.ARBITRARY)

    partials = pl.pallas_call(
        kernel,
        out_shape=jax.ShapeDtypeStruct((num_splits, 2), jnp.float32),
        grid_spec=pltpu.PrefetchScalarGridSpec(
            num_scalar_prefetch=0,
            grid=(num_splits, spc),
            in_specs=[
                pl.BlockSpec((eff_tile, LANES), in_map),
                pl.BlockSpec((eff_tile, LANES), in_map),
            ],
            out_specs=pl.BlockSpec((1, 2), lambda c, i: (c, 0),
                                   memory_space=pltpu.MemorySpace.SMEM),
            scratch_shapes=[
                pltpu.VMEM(acc_shape, jnp.float32),
                pltpu.VMEM(acc_shape, jnp.float32),
            ],
        ),
        compiler_params=pltpu.CompilerParams(
            dimension_semantics=dim_sems,
            vmem_limit_bytes=vmem_limit,
        ),
    )(x2d, y2d)

    smooth = jnp.float32(1e-6)
    intersect = jnp.sum(partials[:, 0])
    denom = jnp.sum(partials[:, 1])          # sum(x*x) + sum(y*y)
    dice = (2.0 * intersect + smooth) / (denom + smooth)
    return jnp.float32(1.0) - dice


def _reference(inputs, target):
    smooth = 1e-6
    x = inputs.astype(jnp.float32)
    y = target.astype(jnp.float32)
    intersect = jnp.sum(x * y)
    y_sum = jnp.sum(y * y)
    z_sum = jnp.sum(x * x)
    dice = (2.0 * intersect + smooth) / (z_sum + y_sum + smooth)
    return 1.0 - dice


if __name__ == "__main__":
    key = jax.random.PRNGKey(0)
    k1, k2 = jax.random.split(key)

    # NCHW inputs, e.g. sigmoid scores vs. binary target mask.
    shape = (2, 4, 16, 16)
    inputs = jax.nn.sigmoid(jax.random.normal(k1, shape, dtype=jnp.float32))
    target = (jax.random.uniform(k2, shape) > 0.5).astype(jnp.float32)

    loss = binary_dice_loss(inputs, target)
    loss = jax.block_until_ready(loss)

    ref = _reference(inputs, target)
    assert jnp.allclose(loss, ref, rtol=1e-5, atol=1e-6), (loss, ref)

    print("KERNEL_OK")
</pallas_src>

<mosaic_0001>
module attributes {stable_mosaic.version = 11 : i64} {
  func.func @_dice_kernel(%arg0: i32, %arg1: i32, %arg2: memref<16x128xf32, #tpu.memory_space<vmem>>, %arg3: memref<16x128xf32, #tpu.memory_space<vmem>>, %arg4: memref<1x2xf32, #tpu.memory_space<smem>>, %arg5: memref<8x128xf32, #tpu.memory_space<vmem>>, %arg6: memref<8x128xf32, #tpu.memory_space<vmem>>) attributes {dimension_semantics = [#tpu.dimension_semantics<arbitrary>, #tpu.dimension_semantics<arbitrary>], iteration_bounds = array<i64: 1, 1>, scalar_prefetch = 0 : i64, scratch_operands = 2 : i64, tpu.core_type = #tpu.core_type<tc>, window_params = [{transform_indices = @transform_0, window_bounds = array<i64: 16, 128>}, {transform_indices = @transform_1, window_bounds = array<i64: 16, 128>}, {transform_indices = @transform_2, window_bounds = array<i64: 1, 2>}]} {
    %c0_i32 = arith.constant 0 : i32
    %0 = arith.cmpi eq, %arg1, %c0_i32 : i32
    %1 = arith.extui %0 : i1 to i32
    %c0_i32_0 = arith.constant 0 : i32
    %2 = arith.cmpi ne, %1, %c0_i32_0 : i32
    scf.if %2 {
      %cst_15 = arith.constant 0.000000e+00 : f32
      %22 = vector.broadcast %cst_15 : f32 to vector<8x128xf32>
      %c0_16 = arith.constant 0 : index
      %c0_17 = arith.constant 0 : index
      %23 = vector.load %arg5[%c0_16, %c0_17] : memref<8x128xf32, #tpu.memory_space<vmem>>, vector<8x128xf32>
      tpu.vector_store %arg5[%c0_16, %c0_17], %22 {strides = array<i32>} : memref<8x128xf32, #tpu.memory_space<vmem>>, vector<8x128xf32>,
      %cst_18 = arith.constant 0.000000e+00 : f32
      %24 = vector.broadcast %cst_18 : f32 to vector<8x128xf32>
      %c0_19 = arith.constant 0 : index
      %c0_20 = arith.constant 0 : index
      %25 = vector.load %arg6[%c0_19, %c0_20] : memref<8x128xf32, #tpu.memory_space<vmem>>, vector<8x128xf32>
      tpu.vector_store %arg6[%c0_19, %c0_20], %24 {strides = array<i32>} : memref<8x128xf32, #tpu.memory_space<vmem>>, vector<8x128xf32>,
    } else {
    }
    %c0 = arith.constant 0 : index
    %c0_1 = arith.constant 0 : index
    %3 = vector.load %arg2[%c0, %c0_1] : memref<16x128xf32, #tpu.memory_space<vmem>>, vector<16x128xf32>
    %c0_2 = arith.constant 0 : index
    %c0_3 = arith.constant 0 : index
    %4 = vector.load %arg3[%c0_2, %c0_3] : memref<16x128xf32, #tpu.memory_space<vmem>>, vector<16x128xf32>
    %5 = arith.mulf %3, %4 : vector<16x128xf32>
    %6 = arith.mulf %3, %3 : vector<16x128xf32>
    %7 = arith.mulf %4, %4 : vector<16x128xf32>
    %8 = arith.addf %6, %7 : vector<16x128xf32>
    %c0_4 = arith.constant 0 : index
    %c0_5 = arith.constant 0 : index
    %9 = vector.load %arg5[%c0_4, %c0_5] : memref<8x128xf32, #tpu.memory_space<vmem>>, vector<8x128xf32>
    %10 = vector.shape_cast %5 : vector<16x128xf32> to vector<2x8x128xf32>
    %cst = arith.constant dense<0.000000e+00> : vector<8x128xf32>
    %11 = vector.multi_reduction <add>, %10, %cst [0] : vector<2x8x128xf32> to vector<8x128xf32>
    %12 = arith.addf %9, %11 : vector<8x128xf32>
    %c0_6 = arith.constant 0 : index
    %c0_7 = arith.constant 0 : index
    %13 = vector.load %arg5[%c0_6, %c0_7] : memref<8x128xf32, #tpu.memory_space<vmem>>, vector<8x128xf32>
    tpu.vector_store %arg5[%c0_6, %c0_7], %12 {strides = array<i32>} : memref<8x128xf32, #tpu.memory_space<vmem>>, vector<8x128xf32>,
    %c0_8 = arith.constant 0 : index
    %c0_9 = arith.constant 0 : index
    %14 = vector.load %arg6[%c0_8, %c0_9] : memref<8x128xf32, #tpu.memory_space<vmem>>, vector<8x128xf32>
    %15 = vector.shape_cast %8 : vector<16x128xf32> to vector<2x8x128xf32>
    %cst_10 = arith.constant dense<0.000000e+00> : vector<8x128xf32>
    %16 = vector.multi_reduction <add>, %15, %cst_10 [0] : vector<2x8x128xf32> to vector<8x128xf32>
    %17 = arith.addf %14, %16 : vector<8x128xf32>
    %c0_11 = arith.constant 0 : index
    %c0_12 = arith.constant 0 : index
    %18 = vector.load %arg6[%c0_11, %c0_12] : memref<8x128xf32, #tpu.memory_space<vmem>>, vector<8x128xf32>
    tpu.vector_store %arg6[%c0_11, %c0_12], %17 {strides = array<i32>} : memref<8x128xf32, #tpu.memory_space<vmem>>, vector<8x128xf32>,
    %c0_i32_13 = arith.constant 0 : i32
    %19 = arith.cmpi eq, %arg1, %c0_i32_13 : i32
    %20 = arith.extui %19 : i1 to i32
    %c0_i32_14 = arith.constant 0 : i32
    %21 = arith.cmpi ne, %20, %c0_i32_14 : i32
    scf.if %21 {
      %c0_15 = arith.constant 0 : index
      %c0_16 = arith.constant 0 : index
      %22 = vector.load %arg5[%c0_15, %c0_16] : memref<8x128xf32, #tpu.memory_space<vmem>>, vector<8x128xf32>
      %23 = vector.shape_cast %22 : vector<8x128xf32> to vector<1x8x128xf32>
      %cst_17 = arith.constant dense<0.000000e+00> : vector<1xf32>
      %24 = vector.multi_reduction <add>, %23, %cst_17 [1, 2] : vector<1x8x128xf32> to vector<1xf32>
      %25 = vector.shape_cast %24 : vector<1xf32> to vector<1x1x1xf32>
      %26 = vector.extract %25[0, 0, 0] : f32 from vector<1x1x1xf32>
      %c0_18 = arith.constant 0 : index
      %c0_19 = arith.constant 0 : index
      %27 = memref.load %arg4[%c0_18, %c0_19] : memref<1x2xf32, #tpu.memory_space<smem>>
      memref.store %26, %arg4[%c0_18, %c0_19] : memref<1x2xf32, #tpu.memory_space<smem>>
      %c0_20 = arith.constant 0 : index
      %c0_21 = arith.constant 0 : index
      %28 = vector.load %arg6[%c0_20, %c0_21] : memref<8x128xf32, #tpu.memory_space<vmem>>, vector<8x128xf32>
      %29 = vector.shape_cast %28 : vector<8x128xf32> to vector<1x8x128xf32>
      %cst_22 = arith.constant dense<0.000000e+00> : vector<1xf32>
      %30 = vector.multi_reduction <add>, %29, %cst_22 [1, 2] : vector<1x8x128xf32> to vector<1xf32>
      %31 = vector.shape_cast %30 : vector<1xf32> to vector<1x1x1xf32>
      %32 = vector.extract %31[0, 0, 0] : f32 from vector<1x1x1xf32>
      %c0_23 = arith.constant 0 : index
      %c1 = arith.constant 1 : index
      %33 = memref.load %arg4[%c0_23, %c1] : memref<1x2xf32, #tpu.memory_space<smem>>
      memref.store %32, %arg4[%c0_23, %c1] : memref<1x2xf32, #tpu.memory_space<smem>>
    } else {
    }
    return
  }
  func.func @transform_0(%arg0: i32, %arg1: i32) -> (i32, i32) {
    %c1_i32 = arith.constant 1 : i32
    %0 = arith.muli %arg0, %c1_i32 : i32
    %1 = arith.addi %0, %arg1 : i32
    %c0_i32 = arith.constant 0 : i32
    %c0_i32_0 = arith.constant 0 : i32
    return %1, %c0_i32 : i32, i32
  }
  func.func @transform_1(%arg0: i32, %arg1: i32) -> (i32, i32) {
    %c1_i32 = arith.constant 1 : i32
    %0 = arith.muli %arg0, %c1_i32 : i32
    %1 = arith.addi %0, %arg1 : i32
    %c0_i32 = arith.constant 0 : i32
    %c0_i32_0 = arith.constant 0 : i32
    return %1, %c0_i32 : i32, i32
  }
  func.func @transform_2(%arg0: i32, %arg1: i32) -> (i32, i32) {
    %c0_i32 = arith.constant 0 : i32
    %c0_i32_0 = arith.constant 0 : i32
    return %arg0, %c0_i32 : i32, i32
  }
}

</mosaic_0001>

<bundles_post_ra>
// kernel: binary_dice_loss.1
= control target key start
LH: loop header
LB: loop body
LE: loop exit
PB: predicated region body
PF: predicated region fallthrough
CT: control target
= control target key end

     0   :  { %s186_s0 = inlined_call_operand.vmem [shape: f32[16,128], index: 0, kind: input, shape index: {}]   ;;  %s187_s1 = inlined_call_operand.vmem [shape: f32[16,128], index: 1, kind: input, shape index: {}]   ;;  %s188_s2 = inlined_call_operand.vmem [shape: f32[1,2], index: 2, kind: output, shape index: {}]  }
   0x1   :  { %v62_v0 = vld [vmem:[%s186_s0] sm:$0xff]  ;;  %v63_v1 = vld [vmem:[%s186_s0 + $0x8] sm:$0xff] }
   0x2   :  { %v64_v2 = vld [vmem:[%s187_s1] sm:$0xff]  ;;  %v65_v3 = vld [vmem:[%s187_s1 + $0x8] sm:$0xff]  ;;  %v68_v5 = vmul.f32 %v62_v0, %v62_v0  ;;  %v69_v6 = vmul.f32 %v63_v1, %v63_v1 }
   0x3   :  { %v66_v4 = vmul.f32 %v64_v2, %v62_v0  ;;  %v70_v7 = vmul.f32 %v64_v2, %v64_v2 }
   0x4   :  { %7 = vsyncpa [#allocation5], 0  ;;  %v67_v8 = vmul.f32 %v65_v3, %v63_v1  ;;  %v71_v9 = vmul.f32 %v65_v3, %v65_v3  ;;  %s115_s18 = sshll.u32 %s188_s2, 4  ;;  %s116_s18 = int_to_ptr.vmem [resolvable:$true] %s115_s18 }
   0x5   :  { %v72_v10 = vadd.f32 %v70_v7, %v68_v5  ;;  %s141_s20 = scalar_lea.vmem %s116_s18, 16  ;;  %p146_p1 = scmp.lt.s32.totalorder %s116_s18, %s116_s18 }
   0x6   :  { %v75_v11 = vadd.f32 %v67_v8, %v66_v4  ;;  %v73_v12 = vadd.f32 %v71_v9, %v69_v6  ;;  %p142_p0 = scmp.ne.s32.totalorder %s116_s18, %s141_s20  ;;  %p147_p2 = scmp.lt.s32.totalorder %s141_s20, %s141_s20 }
   0x8   :  { %86 = vadd.xlane.f32.xlu0 %v75_v11  ;;  %v79_v13 = vadd.f32 %v73_v12, %v72_v10  ;;  %p148_p3 = por %p147_p2, %p146_p1 }
   0xa   :  { %p149_p4 = pnand %p148_p3, %p142_p0 }
   0xc   :  { %98 = vadd.xlane.f32.xlu0 %v79_v13 }
  0x95   :  { %v87_v14 = vpop.xlane.xlu0 %86 }
  0x96   :  { %v88_v15 = vrot.slane %v87_v14, 4 }
  0x98   :  { %v89_v16 = vadd.f32 %v88_v15, %v87_v14 }
  0x99   :  { %v99_v17 = vpop.xlane.xlu0 %98 }
  0x9a   :  { %v90_v18 = vrot.slane %v89_v16, 2  ;;  %v100_v19 = vrot.slane %v99_v17, 4 }
  0x9c   :  { %v101_v20 = vadd.f32 %v100_v19, %v99_v17  ;;  %v91_v21 = vadd.f32 %v90_v18, %v89_v16 }
  0x9e   :  { %v102_v22 = vrot.slane %v101_v20, 2  ;;  %v92_v23 = vrot.slane %v91_v21, 1 }
  0xa0   :  { %v103_v24 = vadd.f32 %v102_v22, %v101_v20  ;;  %v93_v25 = vadd.f32 %v92_v23, %v91_v21 }
  0xa2   :  { %136 = vpush %v93_v25  ;;  %v104_v26 = vrot.slane %v103_v24, 1 }
  0xa4   :  { %v105_v27 = vadd.f32 %v104_v26, %v103_v24 }
  0xa6   :  { %138 = vpush %v105_v27 }
  0xd3   :  { %s137_s0 = spop %136 }
  0xd4   :  { %96 = sst [smem:[#allocation4]] %s137_s0 }
  0xd7   :  { %s139_s19 = spop %138 }
  0xd8   :  { %108 = sst [smem:[#allocation4 + $0x1]] %s139_s19 }
  0xd9   :  { %152 = shalt.err (!%p149_p4)
}
  0xda   :  { %s155_s21 = smov [#allocation4]  }
  0xdb   :  { %118 = dma.smem_to_vmem %s155_s21, 16, %s116_s18, [#allocation5]  }
  0xdc   :  { %153 = dma.done.wait [#allocation5], 16  }
  0xdd   :  { %154 = vsyncadd [#allocation5], 4294967280 }
  0xde   :  { %122 = sfence }
  0xdf   :  { %123 = vsyncpa [#allocation5], 1 }

</bundles_post_ra>
